<compile_context>
chip_gen: v6e
topology: v6e:2x2x1
jax: 0.10.0
libtpu: 0.0.40
codegen_flags: <defaults>
</compile_context>

<pallas_src>
import jax
import jax.numpy as jnp
from jax.experimental import pallas as pl
from jax.experimental.pallas import tpu as pltpu


_SQRT_2_OVER_PI = 0.7978845608028654

_TM_MAX = 512     # rows per M-tile
_TF_MAX = 2048    # d_ff reduction tile cap (reduction path only)


def _round_up(x, m):
    return ((x + m - 1) // m) * m


def _apply_act(h, act):
    if act == "relu":
        return jnp.maximum(h, 0.0)
    if act == "gelu":  # tanh approximation == nn.GELU(approximate='tanh')
        return 0.5 * h * (1.0 + jnp.tanh(_SQRT_2_OVER_PI * (h + 0.044715 * h * h * h)))
    if act == "silu":
        return h * jax.nn.sigmoid(h)
    raise ValueError(f"unknown nonlinearity: {act}")


def _layernorm_f32(x_ref, g_ref, b_ref, eps, mult1):
    """LayerNorm with f32 statistics (x_ref stays f32 in VMEM)."""
    xb = x_ref[...].astype(jnp.float32)
    mean = jnp.mean(xb, axis=-1, keepdims=True)
    xc = xb - mean
    var = jnp.mean(xc * xc, axis=-1, keepdims=True)
    ln = xc * jax.lax.rsqrt(var + eps) * g_ref[...].astype(jnp.float32) \
        + b_ref[...].astype(jnp.float32)
    if mult1 != 1.0:          # Linear.mult folded in-kernel (static; == 1 in module)
        ln = mult1 * ln
    return ln


# ----------------------------------------------------------------------------
# Kernels
# ----------------------------------------------------------------------------
def _make_fast_kernel(act, eps, mult1, mult2, compute_dtype):
    """Weights fully VMEM-resident: grid = (M tiles,), single shot per tile."""

    def kernel(x_ref, g_ref, b_ref, w1_ref, w2_ref, o_ref):
        ln = _layernorm_f32(x_ref, g_ref, b_ref, eps, mult1).astype(compute_dtype)
        h = jnp.dot(ln, w1_ref[...], preferred_element_type=jnp.float32)
        h = _apply_act(h, act)
        out = jnp.dot(h.astype(compute_dtype), w2_ref[...],
                      preferred_element_type=jnp.float32)
        if mult2 != 1.0:
            out = mult2 * out
        o_ref[...] = out.astype(o_ref.dtype)

    return kernel


def _make_reduction_kernel(act, eps, mult1, mult2, compute_dtype, acc_in_out):
    """grid = (M tiles, d_ff tiles); reduce over the d_ff axis.

    If acc_in_out (out_dtype == f32), partial products accumulate directly
    into the resident output block (its index_map ignores the f axis), so no
    separate f32 accumulator scratch is needed.
    """

    def kernel(x_ref, g_ref, b_ref, w1_ref, w2_ref, o_ref, ln_ref, *scratch):
        f = pl.program_id(1)
        acc_ref = o_ref if acc_in_out else scratch[0]

        @pl.when(f == 0)
        def _ln_once():
            ln_ref[...] = _layernorm_f32(x_ref, g_ref, b_ref, eps, mult1
                                         ).astype(ln_ref.dtype)

        h = jnp.dot(ln_ref[...], w1_ref[...], preferred_element_type=jnp.float32)
        h = _apply_act(h, act)
        p = jnp.dot(h.astype(compute_dtype), w2_ref[...],
                    preferred_element_type=jnp.float32)

        @pl.when(f == 0)
        def _first():
            acc_ref[...] = p

        @pl.when(f > 0)
        def _accum():
            acc_ref[...] += p

        if (not acc_in_out) or (mult2 != 1.0):
            @pl.when(f == pl.num_programs(1) - 1)
            def _fin():
                out = acc_ref[...]
                if mult2 != 1.0:
                    out = mult2 * out.astype(jnp.float32)
                o_ref[...] = out.astype(o_ref.dtype)

    return kernel


# ----------------------------------------------------------------------------
# Generation-aware VMEM / tile planning
# ----------------------------------------------------------------------------
def _vmem_plan():
    """Returns (tile budget bytes, vmem_limit cap bytes) for this chip."""
    cap = 64 * 2**20
    try:
        cap = int(pltpu.get_tpu_info().vmem_capacity_bytes)
    except Exception:  # non-TPU / older jax: stay conservative (v7x-safe)
        pass
    if cap >= 96 * 2**20:              # v5e / v6e: 128 MiB VMEM
        return 100 * 2**20, 110 * 2**20
    return 40 * 2**20, 56 * 2**20      # v7x: 64 MiB per TensorCore


def _est_vmem(tm, tf, d, w_item, out_item, *, fast):
    x_bytes = 2 * tm * d * 4                       # f32 x tiles (double-buffered)
    gb_bytes = 2 * 2 * d * 4                       # gamma / beta
    w_bytes = 2 * (d * tf + tf * d) * w_item       # W1^T + W2^T tiles
    out_bytes = 2 * tm * d * out_item
    scratch = 0 if fast else tm * d * (w_item + 4)  # ln scratch + (worst-case) f32 acc
    return x_bytes + gb_bytes + w_bytes + out_bytes + scratch


def _pick_tf(d, d_ff, w_item, out_item, budget, tm_plan):
    """Returns (tf, fast_path)."""
    d_ff_128 = _round_up(d_ff, 128)
    if _est_vmem(tm_plan, d_ff_128, d, w_item, out_item, fast=True) <= budget:
        return d_ff_128, True            # both weight matrices fit: no reduction axis
    tf = min(_TF_MAX, d_ff_128)
    while _est_vmem(tm_plan, tf, d, w_item, out_item, fast=False) > budget and tf > 128:
        tf = _round_up(max(128, tf // 2), 128)
    return tf, False


def _pick_tm(M, pack, tm_max):
    tm = min(tm_max, _round_up(M, pack))
    # v7x megacore: keep >= 2 M-tiles once there is enough work, but never
    # shrink below 256 rows (arithmetic intensity per streamed weight byte).
    if M >= 2 * max(pack, 256):
        tm = min(tm, max(256, _round_up((M + 1) // 2, pack)))
    return max(tm, pack)


# ----------------------------------------------------------------------------
# One-time parameter preparation (hoisted out of the forward path):
# transpose PyTorch-layout weights to (in, out), pad d_ff, cast to bf16.
# ----------------------------------------------------------------------------
def prepare_ffn_params(gamma, beta, w1, w2, *, compute_dtype=jnp.bfloat16,
                       out_dtype=jnp.float32, tf_override=None):
    d_ff, d = w1.shape            # linear_1.weight: (d_ff, d)
    assert w2.shape == (d, d_ff)  # linear_2.weight: (d, d_ff)

    w_item = jnp.dtype(compute_dtype).itemsize
    out_item = jnp.dtype(out_dtype).itemsize
    budget, limit_cap = _vmem_plan()

    if tf_override is not None:   # testing / manual override: force reduction path
        tf, fast = int(tf_override), False
    else:
        tf, fast = _pick_tf(d, d_ff, w_item, out_item, budget, _TM_MAX)
    d_ff_pad = tf if fast else _round_up(d_ff, tf)

    # Zero-padding along d_ff is exact: padded W2 rows are zero, so padded
    # hidden units contribute nothing to the output.
    w1t = jnp.zeros((d, d_ff_pad), compute_dtype).at[:, :d_ff].set(
        w1.T.astype(compute_dtype))
    w2t = jnp.zeros((d_ff_pad, d), compute_dtype).at[:d_ff, :].set(
        w2.T.astype(compute_dtype))
    return dict(
        gamma=gamma.reshape(1, d).astype(jnp.float32),
        beta=beta.reshape(1, d).astype(jnp.float32),
        w1t=w1t, w2t=w2t,
        d=d, d_ff=d_ff, d_ff_pad=d_ff_pad, tf=tf, fast=fast,
        vmem_budget=budget, vmem_limit_cap=limit_cap,
        compute_dtype=compute_dtype, out_dtype=out_dtype,
    )


def feedforward_forward(x, params, *, nonlinear="gelu", eps=1e-5,
                        mult1=1.0, mult2=1.0):
    """FeedForward.forward: layer_norm -> linear_1 -> nonlinear -> linear_2."""
    d = params["d"]
    assert x.shape[-1] == d, f"expected last dim {d}, got {x.shape[-1]}"
    lead = x.shape[:-1]
    compute_dtype = params["compute_dtype"]
    out_dtype = params["out_dtype"]
    w_item = jnp.dtype(compute_dtype).itemsize
    out_item = jnp.dtype(out_dtype).itemsize
    fast = params["fast"]
    tf = params["tf"]
    d_ff_pad = params["d_ff_pad"]

    # x stays f32 into the kernel so LayerNorm statistics are full precision.
    x2d = x.reshape(-1, d).astype(jnp.float32)
    M = x2d.shape[0]
    pack = 16 if w_item == 2 else 8   # sublane packing of the compute dtype
    tm = _pick_tm(M, pack, _TM_MAX)
    M_pad = _round_up(M, tm)
    if M_pad != M:
        # Padded rows are zero -> LayerNorm gives beta (finite); sliced off below.
        x2d = jnp.zeros((M_pad, d), jnp.float32).at[:M].set(x2d)
    grid_m = M_pad // tm

    vmem_est = _est_vmem(tm, tf, d, w_item, out_item, fast=fast)
    vmem_limit = int(min(params["vmem_limit_cap"],
                         max(32 * 2**20, vmem_est + 16 * 2**20)))

    # Truthful HBM traffic: weights are re-streamed once per M-tile
    # (fast path: fetched once since their block index never changes).
    weight_stream = (1 if fast else grid_m) * 2 * d * d_ff_pad * w_item
    cost = pl.CostEstimate(
        flops=int(4 * M_pad * d * d_ff_pad),
        transcendentals=0 if nonlinear == "relu" else int(M_pad * d_ff_pad),
        bytes_accessed=int(weight_stream + M_pad * d * (4 + out_item)),
    )

    if fast:
        kernel = _make_fast_kernel(nonlinear, eps, mult1, mult2, compute_dtype)
        grid_spec = pltpu.PrefetchScalarGridSpec(
            num_scalar_prefetch=0,
            grid=(grid_m,),
            in_specs=[
                pl.BlockSpec((tm, d), lambda i: (i, 0)),            # x rows (f32)
                pl.BlockSpec((1, d), lambda i: (0, 0)),             # gamma
                pl.BlockSpec((1, d), lambda i: (0, 0)),             # beta
                pl.BlockSpec((d, d_ff_pad), lambda i: (0, 0)),      # W1^T (resident)
                pl.BlockSpec((d_ff_pad, d), lambda i: (0, 0)),      # W2^T (resident)
            ],
            out_specs=pl.BlockSpec((tm, d), lambda i: (i, 0)),
        )
        dims = ("parallel",)
    else:
        acc_in_out = jnp.dtype(out_dtype) == jnp.dtype(jnp.float32)
        kernel = _make_reduction_kernel(nonlinear, eps, mult1, mult2,
                                        compute_dtype, acc_in_out)
        scratch = [pltpu.VMEM((tm, d), compute_dtype)]      # layernorm(x) tile
        if not acc_in_out:
            scratch.append(pltpu.VMEM((tm, d), jnp.float32))  # f32 accumulator
        grid_spec = pltpu.PrefetchScalarGridSpec(
            num_scalar_prefetch=0,
            grid=(grid_m, d_ff_pad // tf),
            in_specs=[
                pl.BlockSpec((tm, d), lambda i, f: (i, 0)),   # x rows (f32)
                pl.BlockSpec((1, d), lambda i, f: (0, 0)),    # gamma
                pl.BlockSpec((1, d), lambda i, f: (0, 0)),    # beta
                pl.BlockSpec((d, tf), lambda i, f: (0, f)),   # W1^T tile
                pl.BlockSpec((tf, d), lambda i, f: (f, 0)),   # W2^T tile
            ],
            out_specs=pl.BlockSpec((tm, d), lambda i, f: (i, 0)),
            scratch_shapes=scratch,
        )
        dims = ("parallel", "arbitrary")

    out2d = pl.pallas_call(
        kernel,
        out_shape=jax.ShapeDtypeStruct((M_pad, d), out_dtype),
        grid_spec=grid_spec,
        compiler_params=pltpu.CompilerParams(
            dimension_semantics=dims,
            vmem_limit_bytes=vmem_limit,
        ),
        cost_estimate=cost,
    )(x2d, params["gamma"], params["beta"], params["w1t"], params["w2t"])

    return out2d[:M].reshape(*lead, d)


# ----------------------------------------------------------------------------
# Parameter init matching the PyTorch module (Linear: normal(0, d_in**-0.5)).
# ----------------------------------------------------------------------------
def init_ffn_weights(key, d, d_ff_mult=4, init="standard"):
    d_ff = d_ff_mult * d
    k1, k2 = jax.random.split(key)
    std1 = d ** (-0.5)      # linear_1: d_in = d
    std2 = d_ff ** (-0.5)   # linear_2: d_in = d_ff
    w1 = std1 * jax.random.normal(k1, (d_ff, d), dtype=jnp.float32)
    w2 = std2 * jax.random.normal(k2, (d, d_ff), dtype=jnp.float32)
    gamma = jnp.ones((d,), jnp.float32)
    beta = jnp.zeros((d,), jnp.float32)
    return gamma, beta, w1, w2


def _reference_ffn(x, gamma, beta, w1, w2, eps=1e-5):
    mean = jnp.mean(x, axis=-1, keepdims=True)
    xc = x - mean
    var = jnp.mean(xc * xc, axis=-1, keepdims=True)
    ln = xc * jax.lax.rsqrt(var + eps) * gamma + beta
    h = ln @ w1.T
    h = 0.5 * h * (1.0 + jnp.tanh(_SQRT_2_OVER_PI * (h + 0.044715 * h ** 3)))
    return h @ w2.T


if __name__ == "__main__":
    key = jax.random.PRNGKey(0)
    k_x, k_w, k_x2 = jax.random.split(key, 3)

    # Shapes consistent with the module: batch=2, seq=8, d_model=32, d_ff=4*32.
    batch, seq, d_model = 2, 8, 32
    x = jax.random.normal(k_x, (batch, seq, d_model), dtype=jnp.float32)
    gamma, beta, w1, w2 = init_ffn_weights(k_w, d_model, 4, init="standard")
    y_ref = _reference_ffn(x, gamma, beta, w1, w2)

    # 1) Default path: bf16 matmuls (MXU peak), weights fully VMEM-resident.
    params_bf16 = prepare_ffn_params(gamma, beta, w1, w2)
    y_bf16 = jax.block_until_ready(feedforward_forward(x, params_bf16, nonlinear="gelu"))
    assert y_bf16.shape == (batch, seq, d_model)
    assert jnp.allclose(y_bf16, y_ref, atol=5e-2, rtol=5e-2), (
        float(jnp.max(jnp.abs(y_bf16 - y_ref))))

    # 2) f32 compute, fast path: tight correctness check.
    params_f32 = prepare_ffn_params(gamma, beta, w1, w2, compute_dtype=jnp.float32)
    y_f32 = jax.block_until_ready(feedforward_forward(x, params_f32, nonlinear="gelu"))
    assert jnp.allclose(y_f32, y_ref, atol=1e-4, rtol=1e-4), (
        float(jnp.max(jnp.abs(y_f32 - y_ref))))

    # 3) f32 compute, forced d_ff-reduction path (accumulate into the resident
    #    output block), ragged M (padding) and >= 2 M-tiles (megacore split).
    b2, s2, d2, dffm = 68, 9, 32, 8     # M = 612, d_ff = 256, tf = 128 -> 2 f-steps
    x2 = jax.random.normal(k_x2, (b2, s2, d2), dtype=jnp.float32)
    g2, bt2, w1b, w2b = init_ffn_weights(jax.random.PRNGKey(1), d2, dffm)
    params_red = prepare_ffn_params(g2, bt2, w1b, w2b, compute_dtype=jnp.float32,
                                    tf_override=128)
    y_red = jax.block_until_ready(feedforward_forward(x2, params_red, nonlinear="gelu"))
    y2_ref = _reference_ffn(x2, g2, bt2, w1b, w2b)
    assert y_red.shape == (b2, s2, d2)
    assert jnp.allclose(y_red, y2_ref, atol=1e-4, rtol=1e-4), (
        float(jnp.max(jnp.abs(y_red - y2_ref))))

    print("KERNEL_OK")
</pallas_src>

<mosaic_0001>
module attributes {stable_mosaic.version = 11 : i64} {
  func.func @kernel(%arg0: i32, %arg1: memref<16x32xf32, #tpu.memory_space<vmem>>, %arg2: memref<1x32xf32, #tpu.memory_space<vmem>>, %arg3: memref<1x32xf32, #tpu.memory_space<vmem>>, %arg4: memref<32x128xbf16, #tpu.memory_space<vmem>>, %arg5: memref<128x32xbf16, #tpu.memory_space<vmem>>, %arg6: memref<16x32xf32, #tpu.memory_space<vmem>>) attributes {dimension_semantics = [#tpu.dimension_semantics<parallel>], iteration_bounds = array<i64: 1>, scalar_prefetch = 0 : i64, scratch_operands = 0 : i64, tpu.core_type = #tpu.core_type<tc>, window_params = [{transform_indices = @transform_0, window_bounds = array<i64: 16, 32>}, {pipeline_mode = #tpu.pipeline_mode<synchronous>, transform_indices = @transform_1, window_bounds = array<i64: 1, 32>}, {pipeline_mode = #tpu.pipeline_mode<synchronous>, transform_indices = @transform_2, window_bounds = array<i64: 1, 32>}, {pipeline_mode = #tpu.pipeline_mode<synchronous>, transform_indices = @transform_3, window_bounds = array<i64: 32, 128>}, {pipeline_mode = #tpu.pipeline_mode<synchronous>, transform_indices = @transform_4, window_bounds = array<i64: 128, 32>}, {transform_indices = @transform_5, window_bounds = array<i64: 16, 32>}]} {
    %c0 = arith.constant 0 : index
    %c0_0 = arith.constant 0 : index
    %0 = vector.load %arg1[%c0, %c0_0] : memref<16x32xf32, #tpu.memory_space<vmem>>, vector<16x32xf32>
    %cst = arith.constant dense<0.000000e+00> : vector<16xf32>
    %1 = vector.multi_reduction <add>, %0, %cst [1] : vector<16x32xf32> to vector<16xf32>
    %2 = vector.shape_cast %1 : vector<16xf32> to vector<16x1xf32>
    %cst_1 = arith.constant 3.200000e+01 : f32
    %3 = vector.broadcast %cst_1 : f32 to vector<16x1xf32>
    %4 = arith.divf %2, %3 : vector<16x1xf32>
    %5 = vector.broadcast %4 : vector<16x1xf32> to vector<16x32xf32>
    %6 = arith.subf %0, %5 : vector<16x32xf32>
    %7 = arith.mulf %6, %6 : vector<16x32xf32>
    %cst_2 = arith.constant dense<0.000000e+00> : vector<16xf32>
    %8 = vector.multi_reduction <add>, %7, %cst_2 [1] : vector<16x32xf32> to vector<16xf32>
    %9 = vector.shape_cast %8 : vector<16xf32> to vector<16x1xf32>
    %cst_3 = arith.constant 3.200000e+01 : f32
    %10 = vector.broadcast %cst_3 : f32 to vector<16x1xf32>
    %11 = arith.divf %9, %10 : vector<16x1xf32>
    %cst_4 = arith.constant 9.99999974E-6 : f32
    %12 = vector.broadcast %cst_4 : f32 to vector<16x1xf32>
    %13 = arith.addf %11, %12 : vector<16x1xf32>
    %14 = math.rsqrt %13 : vector<16x1xf32>
    %15 = vector.broadcast %14 : vector<16x1xf32> to vector<16x32xf32>
    %16 = arith.mulf %6, %15 : vector<16x32xf32>
    %c0_5 = arith.constant 0 : index
    %c0_6 = arith.constant 0 : index
    %17 = vector.load %arg2[%c0_5, %c0_6] : memref<1x32xf32, #tpu.memory_space<vmem>>, vector<1x32xf32>
    %18 = vector.broadcast %17 : vector<1x32xf32> to vector<16x32xf32>
    %19 = arith.mulf %16, %18 : vector<16x32xf32>
    %c0_7 = arith.constant 0 : index
    %c0_8 = arith.constant 0 : index
    %20 = vector.load %arg3[%c0_7, %c0_8] : memref<1x32xf32, #tpu.memory_space<vmem>>, vector<1x32xf32>
    %21 = vector.broadcast %20 : vector<1x32xf32> to vector<16x32xf32>
    %22 = arith.addf %19, %21 : vector<16x32xf32>
    %23 = arith.truncf %22 : vector<16x32xf32> to vector<16x32xbf16>
    %c0_9 = arith.constant 0 : index
    %c0_10 = arith.constant 0 : index
    %24 = vector.load %arg4[%c0_9, %c0_10] : memref<32x128xbf16, #tpu.memory_space<vmem>>, vector<32x128xbf16>
    %cst_11 = arith.constant dense<0.000000e+00> : vector<16x128xf32>
    %25 = tpu.matmul %23, %24, %cst_11 {dimension_numbers = #tpu.dot_dimension_numbers<[1], [0], [0], [1], [0, 0, 1, 1], [], []>} : vector<16x32xbf16>, vector<32x128xbf16>, vector<16x128xf32> -> vector<16x128xf32>
    %cst_12 = arith.constant 5.000000e-01 : f32
    %26 = vector.broadcast %cst_12 : f32 to vector<16x128xf32>
    %27 = arith.mulf %26, %25 : vector<16x128xf32>
    %cst_13 = arith.constant 4.471500e-02 : f32
    %28 = vector.broadcast %cst_13 : f32 to vector<16x128xf32>
    %29 = arith.mulf %28, %25 : vector<16x128xf32>
    %30 = arith.mulf %29, %25 : vector<16x128xf32>
    %31 = arith.mulf %30, %25 : vector<16x128xf32>
    %32 = arith.addf %25, %31 : vector<16x128xf32>
    %cst_14 = arith.constant 0.797884583 : f32
    %33 = vector.broadcast %cst_14 : f32 to vector<16x128xf32>
    %34 = arith.mulf %33, %32 : vector<16x128xf32>
    %35 = math.tanh %34 : vector<16x128xf32>
    %cst_15 = arith.constant 1.000000e+00 : f32
    %36 = vector.broadcast %cst_15 : f32 to vector<16x128xf32>
    %37 = arith.addf %36, %35 : vector<16x128xf32>
    %38 = arith.mulf %27, %37 : vector<16x128xf32>
    %39 = arith.truncf %38 : vector<16x128xf32> to vector<16x128xbf16>
    %c0_16 = arith.constant 0 : index
    %c0_17 = arith.constant 0 : index
    %40 = vector.load %arg5[%c0_16, %c0_17] : memref<128x32xbf16, #tpu.memory_space<vmem>>, vector<128x32xbf16>
    %cst_18 = arith.constant dense<0.000000e+00> : vector<16x32xf32>
    %41 = tpu.matmul %39, %40, %cst_18 {dimension_numbers = #tpu.dot_dimension_numbers<[1], [0], [0], [1], [0, 0, 1, 1], [], []>} : vector<16x128xbf16>, vector<128x32xbf16>, vector<16x32xf32> -> vector<16x32xf32>
    %c0_19 = arith.constant 0 : index
    %c0_20 = arith.constant 0 : index
    %42 = vector.load %arg6[%c0_19, %c0_20] : memref<16x32xf32, #tpu.memory_space<vmem>>, vector<16x32xf32>
    tpu.vector_store %arg6[%c0_19, %c0_20], %41 {strides = array<i32>} : memref<16x32xf32, #tpu.memory_space<vmem>>, vector<16x32xf32>,
    return
  }
  func.func @transform_0(%arg0: i32) -> (i32, i32) {
    %c0_i32 = arith.constant 0 : i32
    %c0_i32_0 = arith.constant 0 : i32
    return %arg0, %c0_i32 : i32, i32
  }
  func.func @transform_1(%arg0: i32) -> (i32, i32) {
    %c0_i32 = arith.constant 0 : i32
    %c0_i32_0 = arith.constant 0 : i32
    %c0_i32_1 = arith.constant 0 : i32
    return %c0_i32, %c0_i32_0 : i32, i32
  }
  func.func @transform_2(%arg0: i32) -> (i32, i32) {
    %c0_i32 = arith.constant 0 : i32
    %c0_i32_0 = arith.constant 0 : i32
    %c0_i32_1 = arith.constant 0 : i32
    return %c0_i32, %c0_i32_0 : i32, i32
  }
  func.func @transform_3(%arg0: i32) -> (i32, i32) {
    %c0_i32 = arith.constant 0 : i32
    %c0_i32_0 = arith.constant 0 : i32
    %c0_i32_1 = arith.constant 0 : i32
    return %c0_i32, %c0_i32_0 : i32, i32
  }
  func.func @transform_4(%arg0: i32) -> (i32, i32) {
    %c0_i32 = arith.constant 0 : i32
    %c0_i32_0 = arith.constant 0 : i32
    %c0_i32_1 = arith.constant 0 : i32
    return %c0_i32, %c0_i32_0 : i32, i32
  }
  func.func @transform_5(%arg0: i32) -> (i32, i32) {
    %c0_i32 = arith.constant 0 : i32
    %c0_i32_0 = arith.constant 0 : i32
    return %arg0, %c0_i32 : i32, i32
  }
}

</mosaic_0001>

<bundles_post_ra>
// kernel: tpu_custom_call.1
= control target key start
LH: loop header
LB: loop body
LE: loop exit
PB: predicated region body
PF: predicated region fallthrough
CT: control target
= control target key end

     0   :  { %vm24_vm0 = vcmask 261120   ;;  %s458_s0 = inlined_call_operand.vmem [shape: f32[16,32], index: 0, kind: input, shape index: {}]   ;;  %s459_s1 = inlined_call_operand.vmem [shape: f32[1,32], index: 1, kind: input, shape index: {}]   ;;  %s460_s2 = inlined_call_operand.vmem [shape: f32[1,32], index: 2, kind: input, shape index: {}]   ;;  %s461_s3 = inlined_call_operand.vmem [shape: bf16[32,128], index: 3, kind: input, shape index: {}]   ;;  %s462_s4 = inlined_call_operand.vmem [shape: bf16[128,32], index: 4, kind: input, shape index: {}]   ;;  %s463_s5 = inlined_call_operand.hbm [shape: f32[16,32], index: 5, kind: output, shape index: {}]  }
   0x1   :  { %v22_v0 = vld [vmem:[%s458_s0] sm:$0xff]  ;;  %v23_v1 = vld [vmem:[%s458_s0 + $0x8] sm:$0xff] }
   0x2   :  { %v25_v2 = vsel %vm24_vm0, %v22_v0, 0.0  ;;  %v28_v3 = vsel %vm24_vm0, %v23_v1, 0.0 }
   0x3   :  { %26 = vadd.xlane.f32.xlu0 %v25_v2 }
   0x7   :  { %29 = vadd.xlane.f32.xlu0 %v28_v3 }
   0x8   :  { %10 = vsyncpa [#allocation3], 0  ;;  %v331_v14 = vld [vmem:[%s461_s3 + $0x8] sm:$0xff]   ;;  %v371_v15 = vmov 0.0   ;;  %vm372_vm1 = vmmov 0   ;;  %v332_v16 = vld [vmem:[%s461_s3] sm:$0xff]  }
   0x9   :  { %298 = vmatprep.subr.bf16.mxu0 %v371_v15  ;;  %302 = vmatprep.mubr.msk.bf16.mxu0 %vm372_vm1, %v371_v15  ;;  %v273_v25 = vld [vmem:[%s459_s1] ss:$0 sm:$0xff]  ;;  %v333_v34 = vld [vmem:[%s462_s4 + $0x38] sm:$0xff]   ;;  %v334_v35 = vld [vmem:[%s462_s4 + $0x30] sm:$0xff]  }
   0xa   :  { %299 = vmatpush3.bf16.msra.mxu0 %v331_v14  ;;  %306 = vmatprep.subr.bf16.mxu1 %v371_v15  ;;  %v274_v29 = vld [vmem:[%s460_s2] ss:$0 sm:$0xff]  ;;  %v335_v36 = vld [vmem:[%s462_s4 + $0x28] sm:$0xff]   ;;  %v337_v38 = vld [vmem:[%s462_s4 + $0x18] sm:$0xff]  }
   0xb   :  { %300 = vmatprep.subr.bf16.mxu0 %v371_v15  ;;  %322 = vmatprep.mubr.msk.bf16.mxu1 %vm372_vm1, %v371_v15  ;;  %v336_v37 = vld [vmem:[%s462_s4 + $0x20] sm:$0xff]   ;;  %v338_v39 = vld [vmem:[%s462_s4 + $0x10] sm:$0xff]   ;;  %v339_v40 = vld [vmem:[%s462_s4 + $0x8] sm:$0xff]  }
   0xc   :  { %307 = vmatpush3.bf16.msra.mxu1 %v333_v34  ;;  %v340_v41 = vld [vmem:[%s462_s4] sm:$0xff]   ;;  %s373_s4 = smov [#allocation2]  }
   0xd   :  { %308 = vmatprep.subr.bf16.mxu1 %v371_v15  ;;  %s262_s17 = sshll.u32 %s373_s4, 4  ;;  %s263_s17 = int_to_ptr.vmem [resolvable:$true] %s262_s17 }
   0xe   :  { %301 = vmatpush3.bf16.msra.mxu0 %v332_v16  ;;  %s349_s18 = scalar_lea.vmem %s263_s17, 256  ;;  %p354_p1 = scmp.lt.s32.totalorder %s263_s17, %s263_s17 }
   0xf   :  { %p350_p0 = scmp.ne.s32.totalorder %s263_s17, %s349_s18  ;;  %p355_p2 = scmp.lt.s32.totalorder %s349_s18, %s349_s18 }
  0x10   :  { %309 = vmatpush3.bf16.msra.mxu1 %v334_v35 }
  0x11   :  { %310 = vmatprep.subr.bf16.mxu1 %v371_v15  ;;  %p356_p3 = por %p355_p2, %p354_p1 }
  0x13   :  { %p357_p4 = pnand %p356_p3, %p350_p0 }
  0x14   :  { %311 = vmatpush3.bf16.msra.mxu1 %v335_v36 }
  0x15   :  { %312 = vmatprep.subr.bf16.mxu1 %v371_v15 }
  0x18   :  { %313 = vmatpush3.bf16.msra.mxu1 %v336_v37 }
  0x19   :  { %314 = vmatprep.subr.bf16.mxu1 %v371_v15 }
  0x1c   :  { %315 = vmatpush3.bf16.msra.mxu1 %v337_v38 }
  0x1d   :  { %316 = vmatprep.subr.bf16.mxu1 %v371_v15 }
  0x20   :  { %317 = vmatpush3.bf16.msra.mxu1 %v338_v39 }
  0x21   :  { %318 = vmatprep.subr.bf16.mxu1 %v371_v15 }
  0x24   :  { %319 = vmatpush3.bf16.msra.mxu1 %v339_v40 }
  0x25   :  { %320 = vmatprep.subr.bf16.mxu1 %v371_v15 }
  0x28   :  { %321 = vmatpush3.bf16.msra.mxu1 %v340_v41 }
  0x8c   :  { %v27_v4 = vpop.xlane.xlu0 %26 }
  0x8d   :  { %v32_v5 = vmul.f32 0.03125, %v27_v4 }
  0x8f   :  { %v34_v6 = vsub.f32 %v22_v0, %v32_v5 }
  0x90   :  { %v30_v7 = vpop.xlane.xlu0 %29 }
  0x91   :  { %v33_v8 = vmul.f32 0.03125, %v30_v7  ;;  %v36_v9 = vmul.f32 %v34_v6, %v34_v6 }
  0x93   :  { %v35_v10 = vsub.f32 %v23_v1, %v33_v8  ;;  %v38_v11 = vsel %vm24_vm0, %v36_v9, 0.0 }
  0x94   :  { %39 = vadd.xlane.f32.xlu1 %v38_v11 }
  0x95   :  { %v37_v12 = vmul.f32 %v35_v10, %v35_v10 }
  0x97   :  { %v41_v13 = vsel %vm24_vm0, %v37_v12, 0.0 }
  0x98   :  { %42 = vadd.xlane.f32.xlu1 %v41_v13 }
 0x11d   :  { %v40_v17 = vpop.xlane.xlu1 %39 }
 0x11e   :  { %v44_v18 = vmul.f32 0.03125, %v40_v17 }
 0x120   :  { %v46_v19 = vadd.f32 1e-05, %v44_v18 }
 0x121   :  { %v43_v20 = vpop.xlane.xlu1 %42 }
 0x122   :  { %341 = vrsqrt.f32 %v46_v19  ;;  %v45_v21 = vmul.f32 0.03125, %v43_v20 }
 0x124   :  { %v47_v22 = vadd.f32 1e-05, %v45_v21 }
 0x126   :  { %343 = vrsqrt.f32 %v47_v22 }
 0x12f   :  { %v342_v23 = vpop.eup %341 }
 0x130   :  { %v50_v24 = vmul.f32 %v342_v23, %v34_v6 }
 0x132   :  { %v59_v28 = vmul.f32 %v273_v25, %v50_v24 }
 0x133   :  { %v344_v26 = vpop.eup %343 }
 0x134   :  { %v51_v27 = vmul.f32 %v344_v26, %v35_v10  ;;  %v68_v31 = vadd.f32 %v274_v29, %v59_v28 }
 0x136   :  { %v60_v30 = vmul.f32 %v273_v25, %v51_v27 }
 0x138   :  { %v69_v32 = vadd.f32 %v274_v29, %v60_v30 }
 0x13a   :  { %v70_v33 = vpack.c.bf16 %v69_v32, %v68_v31 }
 0x13c   :  { %303 = vmatmul.mubr.msk.bf16.vlgmr.msra.gmra.mxu0 %vm24_vm0, %v70_v33 }
 0x1fc   :  { %v124_v42 = vpop.f32.mrf.mxu0 }
 0x1fd   :  { %v133_v43 = vmul.f32 0.044715, %v124_v42  ;;  %v131_v59 = vmul.f32 0.5, %v124_v42 }
 0x1fe   :  { %v304_v44 = vpop.f32.mrf.mxu0 }
 0x1ff   :  { %v135_v45 = vmul.f32 %v133_v43, %v124_v42 }
 0x200   :  { %v127_v46 = vpop.f32.mrf.mxu0 }
 0x201   :  { %v137_v47 = vmul.f32 %v135_v45, %v124_v42  ;;  %v134_v48 = vmul.f32 0.044715, %v127_v46  ;;  %v132_v60 = vmul.f32 0.5, %v127_v46 }
 0x202   :  { %v305_v49 = vpop.f32.mrf.mxu0 }
 0x203   :  { %v139_v50 = vadd.f32 %v137_v47, %v124_v42  ;;  %v136_v51 = vmul.f32 %v134_v48, %v127_v46 }
 0x205   :  { %v141_v52 = vmul.f32 0.7978846, %v139_v50  ;;  %v138_v53 = vmul.f32 %v136_v51, %v127_v46 }
 0x207   :  { %345 = vtanh.f32 %v141_v52  ;;  %v140_v54 = vadd.f32 %v138_v53, %v127_v46 }
 0x209   :  { %v142_v55 = vmul.f32 0.7978846, %v140_v54 }
 0x20b   :  { %347 = vtanh.f32 %v142_v55 }
 0x214   :  { %v346_v56 = vpop.eup %345 }
 0x215   :  { %v145_v57 = vadd.f32 1.0, %v346_v56 }
 0x217   :  { %v147_v62 = vmul.f32 %v145_v57, %v131_v59 }
 0x218   :  { %v348_v58 = vpop.eup %347 }
 0x219   :  { %v146_v61 = vadd.f32 1.0, %v348_v58 }
 0x21b   :  { %v148_v63 = vmul.f32 %v146_v61, %v132_v60 }
 0x21d   :  { %v149_v0 = vpack.c.bf16 %v148_v63, %v147_v62 }
 0x21f   :  { %323 = vmatmul.mubr.bf16.vlgmr.msra.gmra.mxu1 %v149_v0 }
 0x2df   :  { %v248_v1 = vpop.f32.mrf.mxu1 }
 0x2e0   :  { %255 = vst.msk [vmem:[#allocation2] sm:$0xff] %vm24_vm0, %v248_v1 }
 0x2e1   :  { %v324_v2 = vpop.f32.mrf.mxu1 }
 0x2e3   :  { %v251_v3 = vpop.f32.mrf.mxu1 }
 0x2e4   :  { %256 = vst.msk [vmem:[#allocation2 + $0x8] sm:$0xff] %vm24_vm0, %v251_v3 }
 0x2e5   :  { %v325_v4 = vpop.f32.mrf.mxu1 }
 0x2e6   :  { %360 = shalt.err (!%p357_p4)
}
 0x2e7   :  { %s374_s19 = smov 128   ;;  %s375_s20 = smov 8  }
 0x2e8   :  { %268 = dma.vmem_to_hbm [thread:$0]  %s263_s17, 256, %s463_s5, [#allocation3], %s374_s19, %s374_s19, %s375_s20  }
 0x2e9   :  { %369 = dma.done.wait [#allocation3], 256  }
 0x2ea   :  { %370 = vsyncadd [#allocation3], 4294967040 }
 0x2eb   :  { %272 = vsyncpa [#allocation3], 1 }

</bundles_post_ra>
